<compile_context>
chip_gen: v7x
topology: tpu7x:2x2x1
jax: 0.10.0
libtpu: 0.0.40
codegen_flags: <defaults>
</compile_context>

<pallas_src>
import functools

import jax
import jax.numpy as jnp
from jax import lax
from jax.experimental import pallas as pl
from jax.experimental.pallas import tpu as pltpu

LANE = 128
VMEM_LIMIT = 32 * 1024 * 1024   # explicit scoped-VMEM limit (safe on v5e/v6e/v7x)


def _round_up(x, m):
    return ((x + m - 1) // m) * m


# ------------------ Pass 1: normalize + pool_layer + h**mu ------------------ #

def pool_kernel(x_ref, wp_ref, bp_ref, h_ref, hmu_ref, *, mu, n_valid):
    tm = x_ref.shape[0]
    x = x_ref[...].astype(jnp.float32)
    # F.normalize(x, dim=1) == x / max(||x||, 1e-12) == x * rsqrt(max(ss, 1e-24))
    sumsq = jnp.sum(x * x, axis=1, keepdims=True)
    x = x * lax.rsqrt(jnp.maximum(sumsq, 1e-24))
    # pool_layer + ReLU (padded weight cols / bias are zero -> padded h cols = 0)
    h = jnp.dot(x, wp_ref[...], preferred_element_type=jnp.float32) + bp_ref[...]
    h = jnp.maximum(h, 0.0)
    # Zero padded rows (otherwise they'd be relu(bp) != 0). Keeps padding inert
    # regardless of adj padding / future dtype or block-skip changes.
    rows = pl.program_id(0) * tm + lax.broadcasted_iota(jnp.int32, (tm, 1), 0)
    h = jnp.where(rows < n_valid, h, 0.0)
    h_ref[...] = h.astype(h_ref.dtype)
    if mu == 2.0:
        hmu = h * h                     # single VPU mul instead of exp/log pow
    else:
        hmu = h ** mu                   # generic path (h >= 0 after ReLU)
    hmu_ref[...] = hmu.astype(hmu_ref.dtype)


# -------- Pass 2: K-tiled aggregation + split self/neighbor projection ------ #

def agg_kernel(h_ref, adj_ref, hmu_ref, w1_ref, w2_ref, b12_ref, o_ref, acc_ref,
               *, mu, apply_relu):
    k = pl.program_id(1)
    nk = pl.num_programs(1)

    # adj_tile @ hmu_tile on the MXU (bf16 operands, f32 accumulation)
    part = jnp.dot(adj_ref[...], hmu_ref[...], preferred_element_type=jnp.float32)

    @pl.when(k == 0)
    def _():
        acc_ref[...] = part             # init with first product: no zero-fill

    @pl.when(k > 0)
    def _():
        acc_ref[...] += part

    @pl.when(k == nk - 1)
    def _():
        # max(., 0) only guards fp rounding before the root; operands are >= 0.
        agg = jnp.maximum(acc_ref[...], 0.0)
        if mu == 2.0:
            agg = jnp.sqrt(agg)
        else:
            agg = agg ** (1.0 / mu)
        # split epilogue: y = h @ W1 + agg @ W2 + (b1 + b2)  (two bf16 MXU pushes,
        # no [h|agg] staging through scratch)
        y = jnp.dot(h_ref[...], w1_ref[...], preferred_element_type=jnp.float32)
        y += jnp.dot(agg.astype(w2_ref.dtype), w2_ref[...],
                     preferred_element_type=jnp.float32)
        y += b12_ref[...]
        if apply_relu:
            y = jnp.maximum(y, 0.0)
        o_ref[...] = y.astype(o_ref.dtype)


# ------------------------------ Layer wrapper ------------------------------- #

def sageconv_layer(x, adj, params, *, mu, apply_relu, out_dtype, n_valid,
                   tm, tk):
    n_pad = x.shape[0]
    f_in_pad = params["wp"].shape[0]
    f_pool_pad = params["wp"].shape[1]
    f_out_pad = params["w1"].shape[1]
    assert n_pad % tm == 0 and n_pad % tk == 0

    # ---- pass 1: row-tiled normalize + pool + relu + h**mu (bf16 outputs) ---- #
    h, hmu = pl.pallas_call(
        functools.partial(pool_kernel, mu=mu, n_valid=n_valid),
        out_shape=(jax.ShapeDtypeStruct((n_pad, f_pool_pad), jnp.bfloat16),
                   jax.ShapeDtypeStruct((n_pad, f_pool_pad), jnp.bfloat16)),
        grid_spec=pltpu.PrefetchScalarGridSpec(
            num_scalar_prefetch=0,
            grid=(n_pad // tm,),
            in_specs=[pl.BlockSpec((tm, f_in_pad), lambda i: (i, 0)),
                      pl.BlockSpec((f_in_pad, f_pool_pad), lambda i: (0, 0)),
                      pl.BlockSpec((1, f_pool_pad), lambda i: (0, 0))],
            out_specs=[pl.BlockSpec((tm, f_pool_pad), lambda i: (i, 0)),
                       pl.BlockSpec((tm, f_pool_pad), lambda i: (i, 0))]),
        compiler_params=pltpu.CompilerParams(
            dimension_semantics=("parallel",),
            vmem_limit_bytes=VMEM_LIMIT),
    )(x, params["wp"], params["bp"])

    # ---- pass 2: (row tile, K tile) aggregation + split output GEMMs ---- #
    y = pl.pallas_call(
        functools.partial(agg_kernel, mu=mu, apply_relu=apply_relu),
        out_shape=jax.ShapeDtypeStruct((n_pad, f_out_pad), out_dtype),
        grid_spec=pltpu.PrefetchScalarGridSpec(
            num_scalar_prefetch=0,
            grid=(n_pad // tm, n_pad // tk),
            in_specs=[pl.BlockSpec((tm, f_pool_pad), lambda i, k: (i, 0)),
                      pl.BlockSpec((tm, tk), lambda i, k: (i, k)),
                      pl.BlockSpec((tk, f_pool_pad), lambda i, k: (k, 0)),
                      pl.BlockSpec((f_pool_pad, f_out_pad), lambda i, k: (0, 0)),
                      pl.BlockSpec((f_pool_pad, f_out_pad), lambda i, k: (0, 0)),
                      pl.BlockSpec((1, f_out_pad), lambda i, k: (0, 0))],
            out_specs=pl.BlockSpec((tm, f_out_pad), lambda i, k: (i, 0)),
            scratch_shapes=[pltpu.VMEM((tm, f_pool_pad), jnp.float32)]),
        compiler_params=pltpu.CompilerParams(
            dimension_semantics=("parallel", "arbitrary"),
            vmem_limit_bytes=VMEM_LIMIT),
    )(h, adj, hmu, params["w1"], params["w2"], params["b12"])
    return y


# --------------------------- Parameter creation ----------------------------- #

def xavier_normal(key, fan_in, fan_out, gain):
    std = gain * jnp.sqrt(2.0 / (fan_in + fan_out))
    # stored as (in_features, out_features), i.e. torch weight transposed
    return std * jax.random.normal(key, (fan_in, fan_out), dtype=jnp.float32)


def linear_bias(key, fan_in, fan_out):
    bound = 1.0 / jnp.sqrt(float(fan_in))
    return jax.random.uniform(key, (fan_out,), minval=-bound, maxval=bound,
                              dtype=jnp.float32)


def _pad2(a, rows, cols):
    return jnp.pad(a, ((0, rows - a.shape[0]), (0, cols - a.shape[1])))


def make_graphsage_params(key, in_features, hidden_features, out_features,
                          n_layers):
    if isinstance(hidden_features, int):
        hidden_features = [hidden_features] * (n_layers - 1)
    n_features = [in_features] + list(hidden_features) + [out_features]
    gain = float(jnp.sqrt(2.0))  # nn.init.calculate_gain('relu')
    layers = []
    for i in range(n_layers):
        f_in, f_out = n_features[i], n_features[i + 1]
        f_in_p = _round_up(f_in, LANE)
        f_out_p = _round_up(f_out, LANE)
        key, kp, kbp, k1, kb1, k2, kb2 = jax.random.split(key, 7)
        wp = xavier_normal(kp, f_in, f_in, gain)     # pool_layer: in -> in
        bp = linear_bias(kbp, f_in, f_in)
        w1 = xavier_normal(k1, f_in, f_out, gain)    # linear1: pool -> out
        b1 = linear_bias(kb1, f_in, f_out)
        w2 = xavier_normal(k2, f_in, f_out, gain)    # linear2: pool -> out
        b2 = linear_bias(kb2, f_in, f_out)
        # pad to lane-dense (multiple-of-128) shapes; W1/W2 stored bf16 for
        # native bf16 MXU pushes and halved VMEM residency; biases pre-summed.
        layers.append({
            "wp": _pad2(wp, f_in_p, f_in_p),
            "bp": _pad2(bp[None, :], 1, f_in_p),
            "w1": _pad2(w1, f_in_p, f_out_p).astype(jnp.bfloat16),
            "w2": _pad2(w2, f_in_p, f_out_p).astype(jnp.bfloat16),
            "b12": _pad2((b1 + b2)[None, :], 1, f_out_p),
            "f_in": f_in,
            "f_out": f_out,
        })
    return layers


# --------------------------------- Forward ---------------------------------- #

def graphsage_forward(x, adj, layer_params, *, mu=2.0, tm=256, tk=256):
    n = x.shape[0]
    n_lane = _round_up(n, LANE)
    # Clamp tiles for small graphs. For v7x at scale prefer tm such that there
    # are >= 2 row tiles (row axis is "parallel" across its two TensorCores).
    tm = min(tm, n_lane)
    tk = min(tk, n_lane)
    n_pad = _round_up(n, max(tm, tk, LANE))
    assert n_pad % tm == 0 and n_pad % tk == 0
    f_in = layer_params[0]["f_in"]
    f_in_pad = layer_params[0]["wp"].shape[0]
    # one-time lane/row padding outside the kernels (pad rows/cols stay inert:
    # pass 1 zeroes pad rows, pad weight cols/bias are zero, adj pads are zero)
    x = jnp.pad(x.astype(jnp.float32), ((0, n_pad - n), (0, f_in_pad - f_in)))
    adj = jnp.pad(adj, ((0, n_pad - n), (0, n_pad - n)))
    n_layers = len(layer_params)
    for i, params in enumerate(layer_params):
        last = i == n_layers - 1
        x = sageconv_layer(
            x, adj, params, mu=mu,
            apply_relu=not last,                     # last layer: activation=None
            out_dtype=jnp.float32 if last else jnp.bfloat16,
            n_valid=n, tm=tm, tk=tk)
    return x[:n, :layer_params[-1]["f_out"]]
    # dropout is 0.0 (identity) and layer_norm=False in the reference config,
    # so neither is materialized here.


def graphsage_reference(x, adj, layer_params, *, mu=2.0):
    """Pure-JAX reference mirroring the kernel's bf16 rounding points."""
    adj_f32 = adj.astype(jnp.float32)
    n_layers = len(layer_params)
    x = x.astype(jnp.float32)
    for i, p in enumerate(layer_params):
        f_in, f_out = p["f_in"], p["f_out"]
        wp = p["wp"][:f_in, :f_in]
        bp = p["bp"][0, :f_in]
        w1 = p["w1"][:f_in, :f_out].astype(jnp.float32)
        w2 = p["w2"][:f_in, :f_out].astype(jnp.float32)
        b12 = p["b12"][0, :f_out]
        xn = x / jnp.maximum(jnp.linalg.norm(x, axis=1, keepdims=True), 1e-12)
        h = jax.nn.relu(xn @ wp + bp)
        h_bf = h.astype(jnp.bfloat16).astype(jnp.float32)
        hmu = (h ** mu).astype(jnp.bfloat16).astype(jnp.float32)
        agg = (adj_f32 @ hmu) ** (1.0 / mu)
        agg_bf = agg.astype(jnp.bfloat16).astype(jnp.float32)
        y = h_bf @ w1 + agg_bf @ w2 + b12
        if i != n_layers - 1:
            y = jax.nn.relu(y)
            y = y.astype(jnp.bfloat16).astype(jnp.float32)   # bf16 intermediates
        x = y
    return x


# ----------------------------------- Main ------------------------------------ #

if __name__ == "__main__":
    N = 256          # nodes (padded internally to a multiple of the row tile)
    IN_F = 16        # in_features
    HID_F = 32       # hidden_features
    OUT_F = 8        # out_features
    N_LAYERS = 2
    MU = 2.0

    key = jax.random.PRNGKey(0)
    key, kx, kadj, kparams = jax.random.split(key, 4)

    # node features
    x = jax.random.normal(kx, (N, IN_F), dtype=jnp.float32)

    # dense, row-normalized, non-negative adjacency (SAGEAdjNorm-style).
    # Kept in bf16 (the only O(N^2) operand) with f32 MXU accumulation.
    mask = (jax.random.uniform(kadj, (N, N)) < 0.05).astype(jnp.float32)
    mask = mask + jnp.eye(N, dtype=jnp.float32)            # self loops
    deg = jnp.sum(mask, axis=1, keepdims=True)
    adj = (mask / jnp.maximum(deg, 1.0)).astype(jnp.bfloat16)

    layer_params = make_graphsage_params(kparams, IN_F, HID_F, OUT_F, N_LAYERS)

    out = graphsage_forward(x, adj, layer_params, mu=MU)
    out = jax.block_until_ready(out)

    assert out.shape == (N, OUT_F), out.shape
    assert bool(jnp.all(jnp.isfinite(out))), "non-finite output"

    ref = graphsage_reference(x, adj, layer_params, mu=MU)
    assert jnp.allclose(out, ref, rtol=5e-2, atol=5e-2), \
        float(jnp.max(jnp.abs(out - ref)))

    print("KERNEL_OK")
</pallas_src>

<mosaic_0001>
module attributes {stable_mosaic.version = 11 : i64} {
  func.func @pool_kernel(%arg0: i32, %arg1: memref<256x128xf32, #tpu.memory_space<vmem>>, %arg2: memref<128x128xf32, #tpu.memory_space<vmem>>, %arg3: memref<1x128xf32, #tpu.memory_space<vmem>>, %arg4: memref<256x128xbf16, #tpu.memory_space<vmem>>, %arg5: memref<256x128xbf16, #tpu.memory_space<vmem>>) attributes {dimension_semantics = [#tpu.dimension_semantics<parallel>], iteration_bounds = array<i64: 1>, scalar_prefetch = 0 : i64, scratch_operands = 0 : i64, tpu.core_type = #tpu.core_type<tc>, window_params = [{transform_indices = @transform_0, window_bounds = array<i64: 256, 128>}, {pipeline_mode = #tpu.pipeline_mode<synchronous>, transform_indices = @transform_1, window_bounds = array<i64: 128, 128>}, {pipeline_mode = #tpu.pipeline_mode<synchronous>, transform_indices = @transform_2, window_bounds = array<i64: 1, 128>}, {transform_indices = @transform_3, window_bounds = array<i64: 256, 128>}, {transform_indices = @transform_4, window_bounds = array<i64: 256, 128>}]} {
    %c0 = arith.constant 0 : index
    %c0_0 = arith.constant 0 : index
    %0 = vector.load %arg1[%c0, %c0_0] : memref<256x128xf32, #tpu.memory_space<vmem>>, vector<256x128xf32>
    %1 = arith.mulf %0, %0 : vector<256x128xf32>
    %cst = arith.constant dense<0.000000e+00> : vector<256xf32>
    %2 = vector.multi_reduction <add>, %1, %cst [1] : vector<256x128xf32> to vector<256xf32>
    %3 = vector.shape_cast %2 : vector<256xf32> to vector<256x1xf32>
    %cst_1 = arith.constant 1.000000e-24 : f32
    %4 = vector.broadcast %cst_1 : f32 to vector<256x1xf32>
    %5 = arith.maximumf %3, %4 : vector<256x1xf32>
    %6 = math.rsqrt %5 : vector<256x1xf32>
    %7 = vector.broadcast %6 : vector<256x1xf32> to vector<256x128xf32>
    %8 = arith.mulf %0, %7 : vector<256x128xf32>
    %c0_2 = arith.constant 0 : index
    %c0_3 = arith.constant 0 : index
    %9 = vector.load %arg2[%c0_2, %c0_3] : memref<128x128xf32, #tpu.memory_space<vmem>>, vector<128x128xf32>
    %cst_4 = arith.constant dense<0.000000e+00> : vector<256x128xf32>
    %10 = tpu.matmul %8, %9, %cst_4 {dimension_numbers = #tpu.dot_dimension_numbers<[1], [0], [0], [1], [0, 0, 1, 1], [], []>} : vector<256x128xf32>, vector<128x128xf32>, vector<256x128xf32> -> vector<256x128xf32>
    %c0_5 = arith.constant 0 : index
    %c0_6 = arith.constant 0 : index
    %11 = vector.load %arg3[%c0_5, %c0_6] : memref<1x128xf32, #tpu.memory_space<vmem>>, vector<1x128xf32>
    %12 = vector.broadcast %11 : vector<1x128xf32> to vector<256x128xf32>
    %13 = arith.addf %10, %12 : vector<256x128xf32>
    %cst_7 = arith.constant 0.000000e+00 : f32
    %14 = vector.broadcast %cst_7 : f32 to vector<256x128xf32>
    %15 = arith.maximumf %13, %14 : vector<256x128xf32>
    %c256_i32 = arith.constant 256 : i32
    %16 = arith.muli %arg0, %c256_i32 : i32
    %17 = tpu.iota {dimensions = array<i32: 0>} : vector<256x1xi32>
    %18 = vector.broadcast %16 : i32 to vector<256x1xi32>
    %19 = arith.addi %18, %17 : vector<256x1xi32>
    %c256_i32_8 = arith.constant 256 : i32
    %20 = vector.broadcast %c256_i32_8 : i32 to vector<256x1xi32>
    %21 = arith.cmpi slt, %19, %20 : vector<256x1xi32>
    %cst_9 = arith.constant 0.000000e+00 : f32
    %22 = vector.shape_cast %21 : vector<256x1xi1> to vector<256x1xi1>
    %23 = vector.broadcast %22 : vector<256x1xi1> to vector<256x128xi1>
    %24 = vector.broadcast %cst_9 : f32 to vector<256x128xf32>
    %25 = arith.select %23, %15, %24 : vector<256x128xi1>, vector<256x128xf32>
    %26 = arith.truncf %25 : vector<256x128xf32> to vector<256x128xbf16>
    %c0_10 = arith.constant 0 : index
    %c0_11 = arith.constant 0 : index
    %27 = vector.load %arg4[%c0_10, %c0_11] : memref<256x128xbf16, #tpu.memory_space<vmem>>, vector<256x128xbf16>
    tpu.vector_store %arg4[%c0_10, %c0_11], %26 {strides = array<i32>} : memref<256x128xbf16, #tpu.memory_space<vmem>>, vector<256x128xbf16>,
    %28 = arith.mulf %25, %25 : vector<256x128xf32>
    %29 = arith.truncf %28 : vector<256x128xf32> to vector<256x128xbf16>
    %c0_12 = arith.constant 0 : index
    %c0_13 = arith.constant 0 : index
    %30 = vector.load %arg5[%c0_12, %c0_13] : memref<256x128xbf16, #tpu.memory_space<vmem>>, vector<256x128xbf16>
    tpu.vector_store %arg5[%c0_12, %c0_13], %29 {strides = array<i32>} : memref<256x128xbf16, #tpu.memory_space<vmem>>, vector<256x128xbf16>,
    return
  }
  func.func @transform_0(%arg0: i32) -> (i32, i32) {
    %c0_i32 = arith.constant 0 : i32
    %c0_i32_0 = arith.constant 0 : i32
    return %arg0, %c0_i32 : i32, i32
  }
  func.func @transform_1(%arg0: i32) -> (i32, i32) {
    %c0_i32 = arith.constant 0 : i32
    %c0_i32_0 = arith.constant 0 : i32
    %c0_i32_1 = arith.constant 0 : i32
    return %c0_i32, %c0_i32_0 : i32, i32
  }
  func.func @transform_2(%arg0: i32) -> (i32, i32) {
    %c0_i32 = arith.constant 0 : i32
    %c0_i32_0 = arith.constant 0 : i32
    %c0_i32_1 = arith.constant 0 : i32
    return %c0_i32, %c0_i32_0 : i32, i32
  }
  func.func @transform_3(%arg0: i32) -> (i32, i32) {
    %c0_i32 = arith.constant 0 : i32
    %c0_i32_0 = arith.constant 0 : i32
    return %arg0, %c0_i32 : i32, i32
  }
  func.func @transform_4(%arg0: i32) -> (i32, i32) {
    %c0_i32 = arith.constant 0 : i32
    %c0_i32_0 = arith.constant 0 : i32
    return %arg0, %c0_i32 : i32, i32
  }
}

</mosaic_0001>

<bundles_post_ra>
// kernel: tpu_custom_call.1
= control target key start
LH: loop header
LB: loop body
LE: loop exit
PB: predicated region body
PF: predicated region fallthrough
CT: control target
= control target key end

     0   :  { %10 = vsyncpa [#allocation3], 0  ;;  %s2079_s0 = inlined_call_operand.hbm [shape: f32[256,128], index: 0, kind: input, shape index: {}]   ;;  %s2080_s1 = inlined_call_operand.hbm [shape: f32[128,128], index: 1, kind: input, shape index: {}]   ;;  %s2081_s2 = inlined_call_operand.vmem [shape: f32[1,128], index: 2, kind: input, shape index: {}]   ;;  %s2082_s3 = inlined_call_operand.hbm [shape: bf16[256,128], index: 3, kind: output, shape index: {0}]   ;;  %s2083_s4 = inlined_call_operand.hbm [shape: bf16[256,128], index: 4, kind: output, shape index: {1}]  }
   0x1   :  { %11 = vsyncpa [#allocation6], 0 }
   0x2   :  { %12 = vsyncpa [#allocation4], 0 }
   0x3   :  { %13 = vsyncpa [#allocation9], 0  ;;  %s1794_s15 = smov [#allocation2]   ;;  %s1698_s19 = scalar_lea.hbm %s2079_s0, 4096 }
   0x4   :  { %s19_s16 = sshll.u32 %s1794_s15, 4  ;;  %p1699_p0 = scmp.ne.s32.totalorder %s2079_s0, %s1698_s19  ;;  %s20_s16 = int_to_ptr.vmem [resolvable:$true] %s19_s16 }
   0x5   :  { %p1702_p1 = scmp.lt.u32.totalorder %s1698_s19, %s2079_s0 }
   0x7   :  { %p1704_p2 = pnand %p1702_p1, %p1699_p0 }
   0x9   :  { %1707 = shalt.err (!%p1704_p2)
}
   0xa   :  { %s1708_s24 = scalar_lea.vmem %s20_s16, 4096  ;;  %p1713_p4 = scmp.lt.s32.totalorder %s20_s16, %s20_s16 }
   0xb   :  { %p1709_p3 = scmp.ne.s32.totalorder %s20_s16, %s1708_s24  ;;  %p1714_p5 = scmp.lt.s32.totalorder %s1708_s24, %s1708_s24 }
   0xd   :  { %p1715_p6 = por %p1714_p5, %p1713_p4 }
   0xf   :  { %p1716_p7 = pnand %p1715_p6, %p1709_p3 }
  0x11   :  { %1719 = shalt.err (!%p1716_p7)
}
  0x12   :  { %s1795_s25 = smov 128   ;;  %s1796_s26 = smov 8  }
  0x13   :  { %25 = dma.hbm_to_vmem [thread:$0]  %s2079_s0, 4096, %s20_s16, [#allocation3], %s1795_s25, %s1795_s25, %s1796_s26  }
  0x14   :  { %s1797_s29 = smov [#allocation5]   ;;  %s1720_s7 = scalar_lea.hbm %s2080_s1, 2048 }
  0x15   :  { %s31_s30 = sshll.u32 %s1797_s29, 4  ;;  %p1721_p8 = scmp.ne.s32.totalorder %s2080_s1, %s1720_s7  ;;  %s32_s30 = int_to_ptr.vmem [resolvable:$true] %s31_s30 }
  0x16   :  { %p1724_p9 = scmp.lt.u32.totalorder %s1720_s7, %s2080_s1 }
  0x18   :  { %p1726_p10 = pnand %p1724_p9, %p1721_p8 }
  0x1a   :  { %1729 = shalt.err (!%p1726_p10)
}
  0x1b   :  { %s1730_s12 = scalar_lea.vmem %s32_s30, 2048  ;;  %p1735_p12 = scmp.lt.s32.totalorder %s32_s30, %s32_s30 }
  0x1c   :  { %p1731_p11 = scmp.ne.s32.totalorder %s32_s30, %s1730_s12  ;;  %p1736_p13 = scmp.lt.s32.totalorder %s1730_s12, %s1730_s12 }
  0x1e   :  { %p1737_p0 = por %p1736_p13, %p1735_p12 }
  0x20   :  { %p1738_p1 = pnand %p1737_p0, %p1731_p11 }
  0x22   :  { %1741 = shalt.err (!%p1738_p1)
}
  0x23   :  { %37 = dma.hbm_to_vmem [thread:$0]  %s2080_s1, 2048, %s32_s30, [#allocation6], %s1795_s25, %s1795_s25, %s1796_s26  }
  0x24   :  { %1786 = dma.done.wait [#allocation3], 4096  }
  0x25   :  { %1787 = vsyncadd [#allocation3], 4294963200 }
  0x26   :  { %1788 = dma.done.wait [#allocation6], 2048  }
  0x27   :  { %1789 = vsyncadd [#allocation6], 4294965248  ;;  %v1851_v0 = vld [vmem:[#allocation2 + $0x8] sm:$0xff]  ;;  %v1853_v1 = vld [vmem:[#allocation2] sm:$0xff]  ;;  %s1799_s16 = smov [#allocation8]  }
  0x28   :  { %v1855_v2 = vld [vmem:[#allocation2 + $0x88] sm:$0xff]  ;;  %v79_v3 = vmul.f32 %v1851_v0, %v1851_v0  ;;  %v78_v4 = vmul.f32 %v1853_v1, %v1853_v1  ;;  %v1861_v5 = vld [vmem:[#allocation2 + $0x80] sm:$0xff]  ;;  %v1867_v8 = vld [vmem:[#allocation2 + $0x90] sm:$0xff]  ;;  %s1114_s17 = sshll.u32 %s1799_s16, 4  ;;  %s2048_s17 = int_to_ptr.vmem [resolvable:$true] %s1114_s17 }
  0x29   :  { %v95_v6 = vmul.f32 %v1855_v2, %v1855_v2  ;;  %v94_v7 = vmul.f32 %v1861_v5, %v1861_v5  ;;  %v1869_v9 = vld [vmem:[#allocation2 + $0x10] sm:$0xff]  ;;  %v96_v10 = vmul.f32 %v1867_v8, %v1867_v8  ;;  %v1875_v12 = vld [vmem:[#allocation2 + $0x98] sm:$0xff]  ;;  %v270_v14 = vld [vmem:[#allocation5] sm:$0xff] }
  0x2a   :  { %112 = vadd.xlane.f32.xlu1 %v79_v3  ;;  %110 = vadd.xlane.f32.xlu0 %v78_v4  ;;  %v80_v11 = vmul.f32 %v1869_v9, %v1869_v9  ;;  %v1877_v13 = vld [vmem:[#allocation2 + $0x18] sm:$0xff]  ;;  %v97_v15 = vmul.f32 %v1875_v12, %v1875_v12  ;;  %v271_v17 = vld [vmem:[#allocation5 + $0x8] sm:$0xff]  ;;  %v272_v18 = vld [vmem:[#allocation5 + $0x10] sm:$0xff] }
  0x2b   :  { %v81_v16 = vmul.f32 %v1877_v13, %v1877_v13  ;;  %v273_v19 = vld [vmem:[#allocation5 + $0x18] sm:$0xff]  ;;  %v1883_v20 = vld [vmem:[#allocation2 + $0xa0] sm:$0xff]  ;;  %v1578_v22 = vpack.c.bf16 %v271_v17, %v270_v14  ;;  %v275_v25 = vld [vmem:[#allocation5 + $0x28] sm:$0xff] }
  0x2c   :  { %v1885_v21 = vld [vmem:[#allocation2 + $0x20] sm:$0xff]  ;;  %v1582_v23 = vpack.c.bf16 %v273_v19, %v272_v18  ;;  %v98_v26 = vmul.f32 %v1883_v20, %v1883_v20  ;;  %v1891_v28 = vld [vmem:[#allocation2 + $0xa8] sm:$0xff]  ;;  %v276_v31 = vld [vmem:[#allocation5 + $0x30] sm:$0xff] }
  0x2d   :  { %1579 = vmatprep.subr.bf16.mxu0 %v1578_v22  ;;  %1610 = vmatprep.subr.bf16.mxu1 %v1578_v22  ;;  %v274_v24 = vld [vmem:[#allocation5 + $0x20] sm:$0xff]  ;;  %v82_v27 = vmul.f32 %v1885_v21, %v1885_v21  ;;  %v1893_v29 = vld [vmem:[#allocation2 + $0x28] sm:$0xff]  ;;  %v277_v32 = vld [vmem:[#allocation5 + $0x38] sm:$0xff]  ;;  %v99_v33 = vmul.f32 %v1891_v28, %v1891_v28 }
  0x2e   :  { %144 = vadd.xlane.f32.xlu1 %v95_v6  ;;  %142 = vadd.xlane.f32.xlu0 %v94_v7  ;;  %v1586_v30 = vpack.c.bf16 %v275_v25, %v274_v24  ;;  %v83_v34 = vmul.f32 %v1893_v29, %v1893_v29  ;;  %v1899_v35 = vld [vmem:[#allocation2 + $0xb0] sm:$0xff]  ;;  %v1590_v37 = vpack.c.bf16 %v277_v32, %v276_v31  ;;  %v278_v38 = vld [vmem:[#allocation5 + $0x40] sm:$0xff]  ;;  %v279_v39 = vld [vmem:[#allocation5 + $0x48] sm:$0xff] }
  0x2f   :  { %1581 = vmatpush3.bf16.msra.mxu0 %v1578_v22  ;;  %1618 = vmatpush3.bf16.msra.mxu1 %v1578_v22  ;;  %v1901_v36 = vld [vmem:[#allocation2 + $0x30] sm:$0xff]  ;;  %v100_v40 = vmul.f32 %v1899_v35, %v1899_v35  ;;  %v1907_v42 = vld [vmem:[#allocation2 + $0xb8] sm:$0xff]  ;;  %v1594_v44 = vpack.c.bf16 %v279_v39, %v278_v38  ;;  %v1915_v49 = vld [vmem:[#allocation2 + $0xc0] sm:$0xff] }
  0x30   :  { %1583 = vmatprep.subr.bf16.mxu0 %v1582_v23  ;;  %1611 = vmatprep.subr.bf16.mxu1 %v1582_v23  ;;  %v84_v41 = vmul.f32 %v1901_v36, %v1901_v36  ;;  %v1909_v43 = vld [vmem:[#allocation2 + $0x38] sm:$0xff]  ;;  %v280_v45 = vld [vmem:[#allocation5 + $0x50] sm:$0xff]  ;;  %v101_v47 = vmul.f32 %v1907_v42, %v1907_v42  ;;  %v1917_v50 = vld [vmem:[#allocation2 + $0x40] sm:$0xff]  ;;  %v102_v54 = vmul.f32 %v1915_v49, %v1915_v49 }
  0x31   :  { %v281_v46 = vld [vmem:[#allocation5 + $0x58] sm:$0xff]  ;;  %v85_v48 = vmul.f32 %v1909_v43, %v1909_v43  ;;  %v282_v52 = vld [vmem:[#allocation5 + $0x60] sm:$0xff]  ;;  %v283_v53 = vld [vmem:[#allocation5 + $0x68] sm:$0xff]  ;;  %v86_v55 = vmul.f32 %v1917_v50, %v1917_v50 }
  0x32   :  { %146 = vadd.xlane.f32.xlu1 %v96_v10  ;;  %114 = vadd.xlane.f32.xlu0 %v80_v11  ;;  %v1598_v51 = vpack.c.bf16 %v281_v46, %v280_v45  ;;  %v1923_v56 = vld [vmem:[#allocation2 + $0xc8] sm:$0xff]  ;;  %v1602_v58 = vpack.c.bf16 %v283_v53, %v282_v52  ;;  %v284_v59 = vld [vmem:[#allocation5 + $0x70] sm:$0xff]  ;;  %v285_v60 = vld [vmem:[#allocation5 + $0x78] sm:$0xff] }
  0x33   :  { %1585 = vmatpush3.bf16.msra.mxu0 %v1582_v23  ;;  %1619 = vmatpush3.bf16.msra.mxu1 %v1582_v23  ;;  %v1925_v57 = vld [vmem:[#allocation2 + $0x48] sm:$0xff]  ;;  %v103_v61 = vmul.f32 %v1923_v56, %v1923_v56  ;;  %v1931_v63 = vld [vmem:[#allocation2 + $0xd0] sm:$0xff]  ;;  %v1606_v4 = vpack.c.bf16 %v285_v60, %v284_v59  ;;  %v1939_v10 = vld [vmem:[#allocation2 + $0xd8] sm:$0xff] }
  0x34   :  { %1587 = vmatprep.subr.bf16.mxu0 %v1586_v30  ;;  %1612 = vmatprep.subr.bf16.mxu1 %v1586_v30  ;;  %v87_v62 = vmul.f32 %v1925_v57, %v1925_v57  ;;  %v1933_v3 = vld [vmem:[#allocation2 + $0x50] sm:$0xff]  ;;  %v104_v6 = vmul.f32 %v1931_v63, %v1931_v63  ;;  %v1941_v11 = vld [vmem:[#allocation2 + $0x58] sm:$0xff]  ;;  %v105_v14 = vmul.f32 %v1939_v10, %v1939_v10  ;;  %v1949_v17 = vld [vmem:[#allocation2 + $0x60] sm:$0xff] }
  0x35   :  { %v88_v7 = vmul.f32 %v1933_v3, %v1933_v3  ;;  %v90_v19 = vmul.f32 %v1949_v17, %v1949_v17  ;;  %v1955_v22 = vld [vmem:[#allocation2 + $0xe8] sm:$0xff]  ;;  %v1971_v32 = vld [vmem:[#allocation2 + $0xf8] sm:$0xff] }
  0x36   :  { %148 = vadd.xlane.f32.xlu1 %v97_v15  ;;  %116 = vadd.xlane.f32.xlu0 %v81_v16  ;;  %v89_v15 = vmul.f32 %v1941_v11, %v1941_v11  ;;  %v1947_v16 = vld [vmem:[#allocation2 + $0xe0] sm:$0xff]  ;;  %v1957_v23 = vld [vmem:[#allocation2 + $0x68] sm:$0xff]  ;;  %v107_v24 = vmul.f32 %v1955_v22, %v1955_v22 }
  0x37   :  { %1589 = vmatpush3.bf16.msra.mxu0 %v1586_v30  ;;  %1620 = vmatpush3.bf16.msra.mxu1 %v1586_v30  ;;  %v106_v18 = vmul.f32 %v1947_v16, %v1947_v16  ;;  %v91_v25 = vmul.f32 %v1957_v23, %v1957_v23 }
  0x38   :  { %1591 = vmatprep.subr.bf16.mxu0 %v1590_v37  ;;  %1613 = vmatprep.subr.bf16.mxu1 %v1590_v37 }
  0x3a   :  { %150 = vadd.xlane.f32.xlu1 %v98_v26  ;;  %118 = vadd.xlane.f32.xlu0 %v82_v27  ;;  %v1963_v26 = vld [vmem:[#allocation2 + $0xf0] sm:$0xff] }
  0x3b   :  { %1593 = vmatpush3.bf16.msra.mxu0 %v1590_v37  ;;  %1621 = vmatpush3.bf16.msra.mxu1 %v1590_v37  ;;  %v1965_v27 = vld [vmem:[#allocation2 + $0x70] sm:$0xff]  ;;  %v108_v30 = vmul.f32 %v1963_v26, %v1963_v26 }
  0x3c   :  { %1595 = vmatprep.subr.bf16.mxu0 %v1594_v44  ;;  %1614 = vmatprep.subr.bf16.mxu1 %v1594_v44  ;;  %v92_v31 = vmul.f32 %v1965_v27, %v1965_v27 }
  0x3e   :  { %152 = vadd.xlane.f32.xlu1 %v99_v33  ;;  %120 = vadd.xlane.f32.xlu0 %v83_v34  ;;  %v1973_v33 = vld [vmem:[#allocation2 + $0x78] sm:$0xff]  ;;  %v109_v34 = vmul.f32 %v1971_v32, %v1971_v32 }
  0x3f   :  { %1597 = vmatpush3.bf16.msra.mxu0 %v1594_v44  ;;  %1622 = vmatpush3.bf16.msra.mxu1 %v1594_v44  ;;  %v93_v37 = vmul.f32 %v1973_v33, %v1973_v33 }
  0x40   :  { %1599 = vmatprep.subr.bf16.mxu0 %v1598_v51  ;;  %1615 = vmatprep.subr.bf16.mxu1 %v1598_v51 }
  0x42   :  { %154 = vadd.xlane.f32.xlu1 %v100_v40  ;;  %122 = vadd.xlane.f32.xlu0 %v84_v41 }
  0x43   :  { %1601 = vmatpush3.bf16.msra.mxu0 %v1598_v51  ;;  %1623 = vmatpush3.bf16.msra.mxu1 %v1598_v51 }
  0x44   :  { %1603 = vmatprep.subr.bf16.mxu0 %v1602_v58  ;;  %1616 = vmatprep.subr.bf16.mxu1 %v1602_v58 }
  0x46   :  { %156 = vadd.xlane.f32.xlu1 %v101_v47  ;;  %124 = vadd.xlane.f32.xlu0 %v85_v48 }
  0x47   :  { %1605 = vmatpush3.bf16.msra.mxu0 %v1602_v58  ;;  %1624 = vmatpush3.bf16.msra.mxu1 %v1602_v58 }
  0x48   :  { %1607 = vmatprep.subr.bf16.mxu0 %v1606_v4  ;;  %1617 = vmatprep.subr.bf16.mxu1 %v1606_v4 }
  0x4a   :  { %158 = vadd.xlane.f32.xlu1 %v102_v54  ;;  %126 = vadd.xlane.f32.xlu0 %v86_v55 }
  0x4b   :  { %1609 = vmatpush3.bf16.msra.mxu0 %v1606_v4  ;;  %1625 = vmatpush3.bf16.msra.mxu1 %v1606_v4 }
  0x4e   :  { %160 = vadd.xlane.f32.xlu1 %v103_v61  ;;  %128 = vadd.xlane.f32.xlu0 %v87_v62 }
  0x52   :  { %162 = vadd.xlane.f32.xlu1 %v104_v6  ;;  %130 = vadd.xlane.f32.xlu0 %v88_v7 }
  0x56   :  { %164 = vadd.xlane.f32.xlu1 %v105_v14  ;;  %132 = vadd.xlane.f32.xlu0 %v89_v15 }
  0x5a   :  { %166 = vadd.xlane.f32.xlu1 %v106_v18  ;;  %134 = vadd.xlane.f32.xlu0 %v90_v19 }
  0x5e   :  { %168 = vadd.xlane.f32.xlu1 %v107_v24  ;;  %136 = vadd.xlane.f32.xlu0 %v91_v25 }
  0x62   :  { %170 = vadd.xlane.f32.xlu1 %v108_v30  ;;  %138 = vadd.xlane.f32.xlu0 %v92_v31 }
  0x66   :  { %172 = vadd.xlane.f32.xlu1 %v109_v34  ;;  %140 = vadd.xlane.f32.xlu0 %v93_v37 }
  0xb7   :  { %v113_v38 = vpop.xlane.xlu1 %112  ;;  %v111_v39 = vpop.xlane.xlu0 %110 }
  0xb8   :  { %v175_v40 = vmax.f32 %v113_v38, 1e-24  ;;  %v174_v41 = vmax.f32 %v111_v39, 1e-24 }
  0xba   :  { %1634 = vrsqrt.f32 %v175_v40 }
  0xbb   :  { %1636 = vrsqrt.f32 %v174_v41  ;;  %v145_v44 = vpop.xlane.xlu1 %144  ;;  %v143_v45 = vpop.xlane.xlu0 %142 }
  0xbc   :  { %v191_v46 = vmax.f32 %v145_v44, 1e-24  ;;  %v190_v47 = vmax.f32 %v143_v45, 1e-24 }
  0xbe   :  { %1638 = vrsqrt.f32 %v191_v46 }
  0xbf   :  { %1640 = vrsqrt.f32 %v190_v47  ;;  %v147_v48 = vpop.xlane.xlu1 %146  ;;  %v115_v51 = vpop.xlane.xlu0 %114 }
  0xc0   :  { %v192_v52 = vmax.f32 %v147_v48, 1e-24  ;;  %v176_v53 = vmax.f32 %v115_v51, 1e-24 }
  0xc2   :  { %1642 = vrsqrt.f32 %v192_v52 }
  0xc3   :  { %1644 = vrsqrt.f32 %v176_v53  ;;  %v149_v54 = vpop.xlane.xlu1 %148  ;;  %v117_v55 = vpop.xlane.xlu0 %116 }
  0xc4   :  { %v1635_v58 = vpop.eup %1634  ;;  %v193_v59 = vmax.f32 %v149_v54, 1e-24  ;;  %v177_v60 = vmax.f32 %v117_v55, 1e-24 }
  0xc5   :  { %v1637_v61 = vpop.eup %1636  ;;  %v239_v62 = vmul.f32 %v1635_v58, %v1851_v0 }
  0xc6   :  { %1646 = vrsqrt.f32 %v193_v59  ;;  %v238_v4 = vmul.f32 %v1637_v61, %v1853_v1 }
  0xc7   :  { %1648 = vrsqrt.f32 %v177_v60  ;;  %v151_v6 = vpop.xlane.xlu1 %150  ;;  %v119_v7 = vpop.xlane.xlu0 %118 }
  0xc8   :  { %v1639_v14 = vpop.eup %1638  ;;  %v194_v15 = vmax.f32 %v151_v6, 1e-24  ;;  %1530 = vmatprep.mubr.f32.mxu0 %v238_v4  ;;  %v178_v18 = vmax.f32 %v119_v7, 1e-24 }
  0xc9   :  { %v1641_v19 = vpop.eup %1640  ;;  %1531 = vmatmul.mubr.f32.vlgmr.msra.gmra.mrb[0].mxu0 %v239_v62  ;;  %v255_v24 = vmul.f32 %v1639_v14, %v1855_v2 }
  0xca   :  { %1650 = vrsqrt.f32 %v194_v15  ;;  %v254_v25 = vmul.f32 %v1641_v19, %v1861_v5 }
  0xcb   :  { %1652 = vrsqrt.f32 %v178_v18  ;;  %v153_v30 = vpop.xlane.xlu1 %152  ;;  %v121_v0 = vpop.xlane.xlu0 %120 }
  0xcc   :  { %v1643_v31 = vpop.eup %1642  ;;  %v195_v34 = vmax.f32 %v153_v30, 1e-24  ;;  %1554 = vmatprep.mubr.f32.mxu1 %v254_v25  ;;  %v179_v1 = vmax.f32 %v121_v0, 1e-24 }
  0xcd   :  { %v1645_v37 = vpop.eup %1644  ;;  %1555 = vmatmul.mubr.f32.vlgmr.msra.gmra.mrb[0].mxu1 %v255_v24  ;;  %v256_v38 = vmul.f32 %v1643_v31, %v1867_v8 }
  0xce   :  { %1654 = vrsqrt.f32 %v195_v34  ;;  %v240_v39 = vmul.f32 %v1645_v37, %v1869_v9 }
  0xcf   :  { %1656 = vrsqrt.f32 %v179_v1  ;;  %v155_v40 = vpop.xlane.xlu1 %154  ;;  %1557 = vmatprep.mubr.f32.mxu1 %v256_v38  ;;  %v123_v2 = vpop.xlane.xlu0 %122 }
  0xd0   :  { %v1647_v41 = vpop.eup %1646  ;;  %v196_v5 = vmax.f32 %v155_v40, 1e-24  ;;  %1533 = vmatprep.mubr.f32.mxu0 %v240_v39  ;;  %v180_v44 = vmax.f32 %v123_v2, 1e-24 }
  0xd1   :  { %v1649_v45 = vpop.eup %1648  ;;  %v257_v46 = vmul.f32 %v1647_v41, %v1875_v12 }
  0xd2   :  { %1658 = vrsqrt.f32 %v196_v5  ;;  %v241_v47 = vmul.f32 %v1649_v45, %v1877_v13 }
  0xd3   :  { %1660 = vrsqrt.f32 %v180_v44  ;;  %v157_v48 = vpop.xlane.xlu1 %156  ;;  %1558 = vmatmul.mubr.f32.gmra.mrb[2].mxu1 %v257_v46  ;;  %v125_v8 = vpop.xlane.xlu0 %124 }
  0xd4   :  { %v1651_v51 = vpop.eup %1650  ;;  %v197_v9 = vmax.f32 %v157_v48, 1e-24  ;;  %1534 = vmatmul.mubr.f32.gmra.mrb[2].mxu0 %v241_v47  ;;  %v181_v52 = vmax.f32 %v125_v8, 1e-24 }
  0xd5   :  { %v1653_v53 = vpop.eup %1652  ;;  %v258_v54 = vmul.f32 %v1651_v51, %v1883_v20 }
  0xd6   :  { %1662 = vrsqrt.f32 %v197_v9  ;;  %v242_v55 = vmul.f32 %v1653_v53, %v1885_v21 }
  0xd7   :  { %1664 = vrsqrt.f32 %v181_v52  ;;  %v159_v58 = vpop.xlane.xlu1 %158  ;;  %1560 = vmatprep.mubr.f32.mxu1 %v258_v54  ;;  %v127_v12 = vpop.xlane.xlu0 %126 }
  0xd8   :  { %v1655_v59 = vpop.eup %1654  ;;  %v198_v13 = vmax.f32 %v159_v58, 1e-24  ;;  %1536 = vmatprep.mubr.f32.mxu0 %v242_v55  ;;  %v182_v60 = vmax.f32 %v127_v12, 1e-24 }
  0xd9   :  { %v1657_v61 = vpop.eup %1656  ;;  %v259_v62 = vmul.f32 %v1655_v59, %v1891_v28 }
  0xda   :  { %1666 = vrsqrt.f32 %v198_v13  ;;  %v243_v4 = vmul.f32 %v1657_v61, %v1893_v29 }
  0xdb   :  { %1668 = vrsqrt.f32 %v182_v60  ;;  %v161_v6 = vpop.xlane.xlu1 %160  ;;  %1561 = vmatmul.mubr.f32.gmra.mrb[4].mxu1 %v259_v62  ;;  %v129_v20 = vpop.xlane.xlu0 %128 }
  0xdc   :  { %v1659_v7 = vpop.eup %1658  ;;  %v199_v21 = vmax.f32 %v161_v6, 1e-24  ;;  %1537 = vmatmul.mubr.f32.gmra.mrb[4].mxu0 %v243_v4  ;;  %v183_v14 = vmax.f32 %v129_v20, 1e-24 }
  0xdd   :  { %v1661_v15 = vpop.eup %1660  ;;  %v260_v18 = vmul.f32 %v1659_v7, %v1899_v35 }
  0xde   :  { %1670 = vrsqrt.f32 %v199_v21  ;;  %v244_v19 = vmul.f32 %v1661_v15, %v1901_v36 }
  0xdf   :  { %1672 = vrsqrt.f32 %v183_v14  ;;  %v163_v24 = vpop.xlane.xlu1 %162  ;;  %1563 = vmatprep.mubr.f32.mxu1 %v260_v18  ;;  %v131_v28 = vpop.xlane.xlu0 %130 }
  0xe0   :  { %v1663_v25 = vpop.eup %1662  ;;  %v200_v29 = vmax.f32 %v163_v24, 1e-24  ;;  %1539 = vmatprep.mubr.f32.mxu0 %v244_v19  ;;  %v184_v30 = vmax.f32 %v131_v28, 1e-24 }
  0xe1   :  { %v1665_v0 = vpop.eup %1664  ;;  %v261_v31 = vmul.f32 %v1663_v25, %v1907_v42 }
  0xe2   :  { %1674 = vrsqrt.f32 %v200_v29  ;;  %v245_v34 = vmul.f32 %v1665_v0, %v1909_v43 }
  0xe3   :  { %1676 = vrsqrt.f32 %v184_v30  ;;  %v165_v1 = vpop.xlane.xlu1 %164  ;;  %1564 = vmatmul.mubr.f32.gmra.mrb[6].mxu1 %v261_v31  ;;  %v133_v35 = vpop.xlane.xlu0 %132 }
  0xe4   :  { %v1667_v37 = vpop.eup %1666  ;;  %v201_v36 = vmax.f32 %v165_v1, 1e-24  ;;  %1540 = vmatmul.mubr.f32.gmra.mrb[6].mxu0 %v245_v34  ;;  %v185_v38 = vmax.f32 %v133_v35, 1e-24 }
  0xe5   :  { %v1669_v39 = vpop.eup %1668  ;;  %v262_v40 = vmul.f32 %v1667_v37, %v1915_v49 }
  0xe6   :  { %1678 = vrsqrt.f32 %v201_v36  ;;  %v246_v2 = vmul.f32 %v1669_v39, %v1917_v50 }
  0xe7   :  { %1680 = vrsqrt.f32 %v185_v38  ;;  %v167_v41 = vpop.xlane.xlu1 %166  ;;  %1566 = vmatprep.mubr.f32.mxu1 %v262_v40  ;;  %v135_v42 = vpop.xlane.xlu0 %134 }
  0xe8   :  { %v1671_v5 = vpop.eup %1670  ;;  %v202_v43 = vmax.f32 %v167_v41, 1e-24  ;;  %1542 = vmatprep.mubr.f32.mxu0 %v246_v2  ;;  %v186_v44 = vmax.f32 %v135_v42, 1e-24 }
  0xe9   :  { %v1673_v45 = vpop.eup %1672  ;;  %v263_v46 = vmul.f32 %v1671_v5, %v1923_v56 }
  0xea   :  { %1682 = vrsqrt.f32 %v202_v43  ;;  %v247_v47 = vmul.f32 %v1673_v45, %v1925_v57 }
  0xeb   :  { %1684 = vrsqrt.f32 %v186_v44  ;;  %v169_v48 = vpop.xlane.xlu1 %168  ;;  %1567 = vmatmul.mubr.f32.gmra.mrb[8].mxu1 %v263_v46  ;;  %v137_v49 = vpop.xlane.xlu0 %136 }
  0xec   :  { %v1675_v8 = vpop.eup %1674  ;;  %v203_v50 = vmax.f32 %v169_v48, 1e-24  ;;  %1543 = vmatmul.mubr.f32.gmra.mrb[8].mxu0 %v247_v47  ;;  %v187_v51 = vmax.f32 %v137_v49, 1e-24 }
  0xed   :  { %v1677_v9 = vpop.eup %1676  ;;  %v264_v52 = vmul.f32 %v1675_v8, %v1931_v63 }
  0xee   :  { %1686 = vrsqrt.f32 %v203_v50  ;;  %v248_v53 = vmul.f32 %v1677_v9, %v1933_v3 }
  0xef   :  { %1688 = vrsqrt.f32 %v187_v51  ;;  %v171_v54 = vpop.xlane.xlu1 %170  ;;  %1569 = vmatprep.mubr.f32.mxu1 %v264_v52  ;;  %v139_v56 = vpop.xlane.xlu0 %138 }
  0xf0   :  { %v1679_v55 = vpop.eup %1678  ;;  %v204_v57 = vmax.f32 %v171_v54, 1e-24  ;;  %1545 = vmatprep.mubr.f32.mxu0 %v248_v53  ;;  %v188_v58 = vmax.f32 %v139_v56, 1e-24 }
  0xf1   :  { %v1681_v12 = vpop.eup %1680  ;;  %v265_v59 = vmul.f32 %v1679_v55, %v1939_v10 }
  0xf2   :  { %1690 = vrsqrt.f32 %v204_v57  ;;  %v249_v13 = vmul.f32 %v1681_v12, %v1941_v11 }
  0xf3   :  { %1692 = vrsqrt.f32 %v188_v58  ;;  %v173_v60 = vpop.xlane.xlu1 %172  ;;  %1570 = vmatmul.mubr.f32.gmra.mrb[10].mxu1 %v265_v59  ;;  %v141_v63 = vpop.xlane.xlu0 %140 }
  0xf4   :  { %v1683_v61 = vpop.eup %1682  ;;  %v205_v3 = vmax.f32 %v173_v60, 1e-24  ;;  %1546 = vmatmul.mubr.f32.gmra.mrb[10].mxu0 %v249_v13  ;;  %v189_v62 = vmax.f32 %v141_v63, 1e-24 }
  0xf5   :  { %v1685_v4 = vpop.eup %1684  ;;  %v266_v6 = vmul.f32 %v1683_v61, %v1947_v16 }
  0xf6   :  { %1694 = vrsqrt.f32 %v205_v3  ;;  %v250_v20 = vmul.f32 %v1685_v4, %v1949_v17 }
  0xf7   :  { %1696 = vrsqrt.f32 %v189_v62  ;;  %1572 = vmatprep.mubr.f32.mxu1 %v266_v6 }
  0xf8   :  { %v1687_v10 = vpop.eup %1686  ;;  %1548 = vmatprep.mubr.f32.mxu0 %v250_v20 }
  0xf9   :  { %v1689_v7 = vpop.eup %1688  ;;  %v267_v11 = vmul.f32 %v1687_v10, %v1955_v22  ;;  %v2014_v22 = vld [vmem:[%s2081_s2] ss:$0 sm:$0xff]  ;;  %s1798_s2 = smov [#allocation7]  }
  0xfa   :  { %v251_v21 = vmul.f32 %v1689_v7, %v1957_v23  ;;  %s1102_s15 = sshll.u32 %s1798_s2, 4  ;;  %s1103_s15 = int_to_ptr.vmem [resolvable:$true] %s1102_s15 }
  0xfb   :  { %1573 = vmatmul.mubr.f32.gmra.mrb[12].mxu1 %v267_v11  ;;  %s1742_s18 = scalar_lea.vmem %s1103_s15, 2048  ;;  %p1747_p3 = scmp.lt.s32.totalorder %s1103_s15, %s1103_s15 }
  0xfc   :  { %v1691_v14 = vpop.eup %1690  ;;  %1549 = vmatmul.mubr.f32.gmra.mrb[12].mxu0 %v251_v21  ;;  %p1743_p2 = scmp.ne.s32.totalorder %s1103_s15, %s1742_s18  ;;  %p1748_p4 = scmp.lt.s32.totalorder %s1742_s18, %s1742_s18 }
  0xfd   :  { %v1693_v15 = vpop.eup %1692  ;;  %v268_v18 = vmul.f32 %v1691_v14, %v1963_v26 }
  0xfe   :  { %v252_v16 = vmul.f32 %v1693_v15, %v1965_v27  ;;  %p1749_p5 = por %p1748_p4, %p1747_p3 }
  0xff   :  { %1575 = vmatprep.mubr.f32.mxu1 %v268_v18 }
 0x100   :  { %v1695_v19 = vpop.eup %1694  ;;  %1551 = vmatprep.mubr.f32.mxu0 %v252_v16  ;;  %p1750_p6 = pnand %p1749_p5, %p1743_p2 }
 0x101   :  { %v1697_v17 = vpop.eup %1696  ;;  %v269_v24 = vmul.f32 %v1695_v19, %v1971_v32 }
 0x102   :  { %v253_v28 = vmul.f32 %v1697_v17, %v1973_v33 }
 0x103   :  { %1576 = vmatmul.mubr.f32.gmra.mrb[14].mxu1 %v269_v24 }
 0x104   :  { %1552 = vmatmul.mubr.f32.gmra.mrb[14].mxu0 %v253_v28 }
 0x19c   :  { %v1532_v23 = vpop.f32.mrb[0].mxu0 }
 0x19d   :  { %v365_v26 = vadd.f32 %v1532_v23, %v2014_v22  ;;  %v359_v25 = vpop.f32.mrb[1].mxu0 }
 0x19e   :  { %v360_v27 = vadd.f32 %v2014_v22, %v359_v25 }
 0x19f   :  { %v519_v29 = vmax.f32 %v365_v26, 0.0 }
 0x1a0   :  { %v518_v30 = vmax.f32 %v360_v27, 0.0  ;;  %v1556_v0 = vpop.f32.mrb[0].mxu1 }
 0x1a1   :  { %v906_v31 = vmul.f32 %v519_v29, %v519_v29  ;;  %v445_v32 = vadd.f32 %v1556_v0, %v2014_v22  ;;  %v439_v33 = vpop.f32.mrb[1].mxu1 }
 0x1a2   :  { %v1263_v34 = vpack.c.bf16 %v519_v29, %v518_v30  ;;  %v905_v1 = vmul.f32 %v518_v30, %v518_v30  ;;  %v440_v35 = vadd.f32 %v2014_v22, %v439_v33 }
 0x1a3   :  { %v535_v37 = vmax.f32 %v445_v32, 0.0 }
 0x1a4   :  { %1264 = vst [vmem:[#allocation7] sm:$0xff] %v1263_v34   ;;  %v1343_v36 = vpack.c.bf16 %v906_v31, %v905_v1  ;;  %v534_v38 = vmax.f32 %v440_v35, 0.0 }
 0x1a5   :  { %v922_v39 = vmul.f32 %v535_v37, %v535_v37 }
 0x1a6   :  { %1344 = vst [vmem:[#allocation8] sm:$0xff] %v1343_v36   ;;  %v1303_v40 = vpack.c.bf16 %v535_v37, %v534_v38  ;;  %v921_v2 = vmul.f32 %v534_v38, %v534_v38  ;;  %v1559_v41 = vpop.f32.mrb[2].mxu1 }
 0x1a7   :  { %v1535_v42 = vpop.f32.mrb[2].mxu0  ;;  %v455_v5 = vadd.f32 %v1559_v41, %v2014_v22  ;;  %v449_v43 = vpop.f32.mrb[3].mxu1 }
 0x1a8   :  { %1427 = vst [vmem:[#allocation7 + $0x40] sm:$0xff] %v1303_v40   ;;  %v1383_v44 = vpack.c.bf16 %v922_v39, %v921_v2  ;;  %v375_v45 = vadd.f32 %v1535_v42, %v2014_v22  ;;  %v369_v46 = vpop.f32.mrb[3].mxu0  ;;  %v450_v47 = vadd.f32 %v2014_v22, %v449_v43 }
 0x1a9   :  { %v537_v48 = vmax.f32 %v455_v5, 0.0  ;;  %v370_v49 = vadd.f32 %v2014_v22, %v369_v46 }
 0x1aa   :  { %1442 = vst [vmem:[#allocation8 + $0x40] sm:$0xff] %v1383_v44   ;;  %v521_v8 = vmax.f32 %v375_v45, 0.0  ;;  %v536_v50 = vmax.f32 %v450_v47, 0.0 }
 0x1ab   :  { %v924_v51 = vmul.f32 %v537_v48, %v537_v48  ;;  %v520_v9 = vmax.f32 %v370_v49, 0.0 }
 0x1ac   :  { %v908_v52 = vmul.f32 %v521_v8, %v521_v8  ;;  %v1308_v53 = vpack.c.bf16 %v537_v48, %v536_v50  ;;  %v923_v54 = vmul.f32 %v536_v50, %v536_v50 }
 0x1ad   :  { %v1268_v56 = vpack.c.bf16 %v521_v8, %v520_v9  ;;  %v907_v55 = vmul.f32 %v520_v9, %v520_v9 }
 0x1ae   :  { %1428 = vst [vmem:[#allocation7 + $0x48] sm:$0xff] %v1308_v53   ;;  %v1388_v57 = vpack.c.bf16 %v924_v51, %v923_v54  ;;  %v1562_v58 = vpop.f32.mrb[4].mxu1 }
 0x1af   :  { %1420 = vst [vmem:[#allocation7 + $0x8] sm:$0xff] %v1268_v56   ;;  %v1348_v12 = vpack.c.bf16 %v908_v52, %v907_v55  ;;  %v1538_v59 = vpop.f32.mrb[4].mxu0  ;;  %v465_v13 = vadd.f32 %v1562_v58, %v2014_v22  ;;  %v459_v60 = vpop.f32.mrb[5].mxu1 }
 0x1b0   :  { %1443 = vst [vmem:[#allocation8 + $0x48] sm:$0xff] %v1388_v57   ;;  %v385_v63 = vadd.f32 %v1538_v59, %v2014_v22  ;;  %v379_v61 = vpop.f32.mrb[5].mxu0  ;;  %v460_v3 = vadd.f32 %v2014_v22, %v459_v60 }
 0x1b1   :  { %1435 = vst [vmem:[#allocation8 + $0x8] sm:$0xff] %v1348_v12   ;;  %v539_v62 = vmax.f32 %v465_v13, 0.0  ;;  %v380_v4 = vadd.f32 %v2014_v22, %v379_v61 }
 0x1b2   :  { %v523_v6 = vmax.f32 %v385_v63, 0.0  ;;  %v538_v20 = vmax.f32 %v460_v3, 0.0 }
 0x1b3   :  { %v926_v10 = vmul.f32 %v539_v62, %v539_v62  ;;  %v522_v7 = vmax.f32 %v380_v4, 0.0 }
 0x1b4   :  { %v910_v11 = vmul.f32 %v523_v6, %v523_v6  ;;  %v1313_v21 = vpack.c.bf16 %v539_v62, %v538_v20  ;;  %v925_v14 = vmul.f32 %v538_v20, %v538_v20 }
 0x1b5   :  { %v1273_v15 = vpack.c.bf16 %v523_v6, %v522_v7  ;;  %v909_v18 = vmul.f32 %v522_v7, %v522_v7 }
 0x1b6   :  { %1429 = vst [vmem:[#allocation7 + $0x50] sm:$0xff] %v1313_v21   ;;  %v1393_v16 = vpack.c.bf16 %v926_v10, %v925_v14  ;;  %v1565_v19 = vpop.f32.mrb[6].mxu1 }
 0x1b7   :  { %1421 = vst [vmem:[#allocation7 + $0x10] sm:$0xff] %v1273_v15   ;;  %v1353_v17 = vpack.c.bf16 %v910_v11, %v909_v18  ;;  %v1541_v24 = vpop.f32.mrb[6].mxu0  ;;  %v475_v28 = vadd.f32 %v1565_v19, %v2014_v22  ;;  %v469_v23 = vpop.f32.mrb[7].mxu1 }
 0x1b8   :  { %1444 = vst [vmem:[#allocation8 + $0x50] sm:$0xff] %v1393_v16   ;;  %v395_v26 = vadd.f32 %v1541_v24, %v2014_v22  ;;  %v389_v25 = vpop.f32.mrb[7].mxu0  ;;  %v470_v27 = vadd.f32 %v2014_v22, %v469_v23 }
 0x1b9   :  { %1436 = vst [vmem:[#allocation8 + $0x10] sm:$0xff] %v1353_v17   ;;  %v541_v29 = vmax.f32 %v475_v28, 0.0  ;;  %v390_v30 = vadd.f32 %v2014_v22, %v389_v25 }
 0x1ba   :  { %v525_v0 = vmax.f32 %v395_v26, 0.0  ;;  %v540_v31 = vmax.f32 %v470_v27, 0.0 }
 0x1bb   :  { %v928_v32 = vmul.f32 %v541_v29, %v541_v29  ;;  %v524_v33 = vmax.f32 %v390_v30, 0.0 }
 0x1bc   :  { %v912_v34 = vmul.f32 %v525_v0, %v525_v0  ;;  %v1318_v1 = vpack.c.bf16 %v541_v29, %v540_v31  ;;  %v927_v35 = vmul.f32 %v540_v31, %v540_v31 }
 0x1bd   :  { %v1278_v37 = vpack.c.bf16 %v525_v0, %v524_v33  ;;  %v911_v36 = vmul.f32 %v524_v33, %v524_v33 }
 0x1be   :  { %1430 = vst [vmem:[#allocation7 + $0x58] sm:$0xff] %v1318_v1   ;;  %v1398_v38 = vpack.c.bf16 %v928_v32, %v927_v35  ;;  %v1568_v39 = vpop.f32.mrb[8].mxu1 }
 0x1bf   :  { %1422 = vst [vmem:[#allocation7 + $0x18] sm:$0xff] %v1278_v37   ;;  %v1358_v40 = vpack.c.bf16 %v912_v34, %v911_v36  ;;  %v1544_v2 = vpop.f32.mrb[8].mxu0  ;;  %v485_v41 = vadd.f32 %v1568_v39, %v2014_v22  ;;  %v479_v42 = vpop.f32.mrb[9].mxu1 }
 0x1c0   :  { %1445 = vst [vmem:[#allocation8 + $0x58] sm:$0xff] %v1398_v38   ;;  %v405_v5 = vadd.f32 %v1544_v2, %v2014_v22  ;;  %v399_v43 = vpop.f32.mrb[9].mxu0  ;;  %v480_v44 = vadd.f32 %v2014_v22, %v479_v42 }
 0x1c1   :  { %1437 = vst [vmem:[#allocation8 + $0x18] sm:$0xff] %v1358_v40   ;;  %v543_v45 = vmax.f32 %v485_v41, 0.0  ;;  %v400_v46 = vadd.f32 %v2014_v22, %v399_v43 }
 0x1c2   :  { %v527_v47 = vmax.f32 %v405_v5, 0.0  ;;  %v542_v48 = vmax.f32 %v480_v44, 0.0 }
 0x1c3   :  { %v930_v49 = vmul.f32 %v543_v45, %v543_v45  ;;  %v526_v8 = vmax.f32 %v400_v46, 0.0 }
 0x1c4   :  { %v914_v50 = vmul.f32 %v527_v47, %v527_v47  ;;  %v1323_v51 = vpack.c.bf16 %v543_v45, %v542_v48  ;;  %v929_v9 = vmul.f32 %v542_v48, %v542_v48 }
 0x1c5   :  { %v1283_v52 = vpack.c.bf16 %v527_v47, %v526_v8  ;;  %v913_v53 = vmul.f32 %v526_v8, %v526_v8 }
 0x1c6   :  { %1431 = vst [vmem:[#allocation7 + $0x60] sm:$0xff] %v1323_v51   ;;  %v1403_v54 = vpack.c.bf16 %v930_v49, %v929_v9  ;;  %v1571_v56 = vpop.f32.mrb[10].mxu1 }
 0x1c7   :  { %1423 = vst [vmem:[#allocation7 + $0x20] sm:$0xff] %v1283_v52   ;;  %v1363_v55 = vpack.c.bf16 %v914_v50, %v913_v53  ;;  %v1547_v57 = vpop.f32.mrb[10].mxu0  ;;  %v495_v58 = vadd.f32 %v1571_v56, %v2014_v22  ;;  %v489_v12 = vpop.f32.mrb[11].mxu1 }
 0x1c8   :  { %1446 = vst [vmem:[#allocation8 + $0x60] sm:$0xff] %v1403_v54   ;;  %v415_v59 = vadd.f32 %v1547_v57, %v2014_v22  ;;  %v409_v13 = vpop.f32.mrb[11].mxu0  ;;  %v490_v60 = vadd.f32 %v2014_v22, %v489_v12 }
 0x1c9   :  { %1438 = vst [vmem:[#allocation8 + $0x20] sm:$0xff] %v1363_v55   ;;  %v545_v63 = vmax.f32 %v495_v58, 0.0  ;;  %v410_v61 = vadd.f32 %v2014_v22, %v409_v13 }
 0x1ca   :  { %v529_v3 = vmax.f32 %v415_v59, 0.0  ;;  %v544_v62 = vmax.f32 %v490_v60, 0.0 }
 0x1cb   :  { %v932_v4 = vmul.f32 %v545_v63, %v545_v63  ;;  %v528_v6 = vmax.f32 %v410_v61, 0.0 }
 0x1cc   :  { %v916_v20 = vmul.f32 %v529_v3, %v529_v3  ;;  %v1328_v10 = vpack.c.bf16 %v545_v63, %v544_v62  ;;  %v931_v7 = vmul.f32 %v544_v62, %v544_v62 }
 0x1cd   :  { %v1288_v11 = vpack.c.bf16 %v529_v3, %v528_v6  ;;  %v915_v21 = vmul.f32 %v528_v6, %v528_v6 }
 0x1ce   :  { %1432 = vst [vmem:[#allocation7 + $0x68] sm:$0xff] %v1328_v10   ;;  %v1408_v14 = vpack.c.bf16 %v932_v4, %v931_v7  ;;  %v1574_v15 = vpop.f32.mrb[12].mxu1 }
 0x1cf   :  { %1424 = vst [vmem:[#allocation7 + $0x28] sm:$0xff] %v1288_v11   ;;  %v1368_v18 = vpack.c.bf16 %v916_v20, %v915_v21  ;;  %v1550_v16 = vpop.f32.mrb[12].mxu0  ;;  %v505_v19 = vadd.f32 %v1574_v15, %v2014_v22  ;;  %v499_v17 = vpop.f32.mrb[13].mxu1 }
 0x1d0   :  { %1447 = vst [vmem:[#allocation8 + $0x68] sm:$0xff] %v1408_v14   ;;  %v425_v24 = vadd.f32 %v1550_v16, %v2014_v22  ;;  %v419_v28 = vpop.f32.mrb[13].mxu0  ;;  %v500_v23 = vadd.f32 %v2014_v22, %v499_v17 }
 0x1d1   :  { %1439 = vst [vmem:[#allocation8 + $0x28] sm:$0xff] %v1368_v18   ;;  %v547_v26 = vmax.f32 %v505_v19, 0.0  ;;  %v420_v25 = vadd.f32 %v2014_v22, %v419_v28 }
 0x1d2   :  { %v531_v27 = vmax.f32 %v425_v24, 0.0  ;;  %v546_v29 = vmax.f32 %v500_v23, 0.0 }
 0x1d3   :  { %v934_v30 = vmul.f32 %v547_v26, %v547_v26  ;;  %v530_v0 = vmax.f32 %v420_v25, 0.0 }
 0x1d4   :  { %v918_v31 = vmul.f32 %v531_v27, %v531_v27  ;;  %v1333_v32 = vpack.c.bf16 %v547_v26, %v546_v29  ;;  %v933_v33 = vmul.f32 %v546_v29, %v546_v29 }
 0x1d5   :  { %v1293_v34 = vpack.c.bf16 %v531_v27, %v530_v0  ;;  %v917_v1 = vmul.f32 %v530_v0, %v530_v0 }
 0x1d6   :  { %1433 = vst [vmem:[#allocation7 + $0x70] sm:$0xff] %v1333_v32   ;;  %v1413_v35 = vpack.c.bf16 %v934_v30, %v933_v33  ;;  %v1577_v37 = vpop.f32.mrb[14].mxu1 }
 0x1d7   :  { %1425 = vst [vmem:[#allocation7 + $0x30] sm:$0xff] %v1293_v34   ;;  %v1373_v36 = vpack.c.bf16 %v918_v31, %v917_v1  ;;  %v1553_v38 = vpop.f32.mrb[14].mxu0  ;;  %v515_v39 = vadd.f32 %v1577_v37, %v2014_v22  ;;  %v509_v40 = vpop.f32.mrb[15].mxu1 }
 0x1d8   :  { %1448 = vst [vmem:[#allocation8 + $0x70] sm:$0xff] %v1413_v35   ;;  %v435_v2 = vadd.f32 %v1553_v38, %v2014_v22  ;;  %v429_v41 = vpop.f32.mrb[15].mxu0  ;;  %v510_v42 = vadd.f32 %v2014_v22, %v509_v40 }
 0x1d9   :  { %1440 = vst [vmem:[#allocation8 + $0x30] sm:$0xff] %v1373_v36   ;;  %v549_v5 = vmax.f32 %v515_v39, 0.0  ;;  %v430_v43 = vadd.f32 %v2014_v22, %v429_v41 }
 0x1da   :  { %v533_v44 = vmax.f32 %v435_v2, 0.0  ;;  %v548_v45 = vmax.f32 %v510_v42, 0.0 }
 0x1db   :  { %v936_v46 = vmul.f32 %v549_v5, %v549_v5  ;;  %v532_v47 = vmax.f32 %v430_v43, 0.0 }
 0x1dc   :  { %v920_v48 = vmul.f32 %v533_v44, %v533_v44  ;;  %v1338_v49 = vpack.c.bf16 %v549_v5, %v548_v45  ;;  %v935_v8 = vmul.f32 %v548_v45, %v548_v45 }
 0x1dd   :  { %v1298_v50 = vpack.c.bf16 %v533_v44, %v532_v47  ;;  %v919_v51 = vmul.f32 %v532_v47, %v532_v47 }
 0x1de   :  { %1434 = vst [vmem:[#allocation7 + $0x78] sm:$0xff] %v1338_v49   ;;  %v1418_v9 = vpack.c.bf16 %v936_v46, %v935_v8 }
 0x1df   :  { %1426 = vst [vmem:[#allocation7 + $0x38] sm:$0xff] %v1298_v50   ;;  %v1378_v52 = vpack.c.bf16 %v920_v48, %v919_v51 }
 0x1e0   :  { %1449 = vst [vmem:[#allocation8 + $0x78] sm:$0xff] %v1418_v9  }
 0x1e1   :  { %1753 = shalt.err (!%p1750_p6)
}
 0x1e2   :  { %s1754_s21 = scalar_lea.hbm %s2082_s3, 2048 }
 0x1e3   :  { %p1755_p7 = scmp.ne.s32.totalorder %s2082_s3, %s1754_s21  ;;  %p1758_p8 = scmp.lt.u32.totalorder %s1754_s21, %s2082_s3 }
 0x1e5   :  { %p1760_p9 = pnand %p1758_p8, %p1755_p7 }
 0x1e7   :  { %1763 = shalt.err (!%p1760_p9)
}
 0x1e8   :  { %s1800_s26 = smov 64   ;;  %s1801_s27 = smov 4   ;;  %1441 = vst [vmem:[#allocation8 + $0x38] sm:$0xff] %v1378_v52  }
 0x1e9   :  { %1108 = dma.vmem_to_hbm [thread:$0]  %s1103_s15, 2048, %s2082_s3, [#allocation4], %s1800_s26, %s1800_s26, %s1801_s27  }
 0x1ea   :  { %s1764_s30 = scalar_lea.vmem %s2048_s17, 2048  ;;  %p1769_p11 = scmp.lt.s32.totalorder %s2048_s17, %s2048_s17 }
 0x1eb   :  { %p1765_p10 = scmp.ne.s32.totalorder %s2048_s17, %s1764_s30  ;;  %p1770_p12 = scmp.lt.s32.totalorder %s1764_s30, %s1764_s30 }
 0x1ed   :  { %p1771_p13 = por %p1770_p12, %p1769_p11 }
 0x1ef   :  { %p1772_p0 = pnand %p1771_p13, %p1765_p10 }
 0x1f1   :  { %1775 = shalt.err (!%p1772_p0)
}
 0x1f2   :  { %s1776_s7 = scalar_lea.hbm %s2083_s4, 2048 }
 0x1f3   :  { %p1777_p1 = scmp.ne.s32.totalorder %s2083_s4, %s1776_s7  ;;  %p1780_p2 = scmp.lt.u32.totalorder %s1776_s7, %s2083_s4 }
 0x1f5   :  { %p1782_p3 = pnand %p1780_p2, %p1777_p1 }
 0x1f7   :  { %1785 = shalt.err (!%p1782_p3)
}
 0x1f8   :  { %1120 = dma.vmem_to_hbm [thread:$0]  %s2048_s17, 2048, %s2083_s4, [#allocation9], %s1800_s26, %s1800_s26, %s1801_s27  }
 0x1f9   :  { %1790 = dma.done.wait [#allocation4], 2048  }
 0x1fa   :  { %1791 = vsyncadd [#allocation4], 4294965248 }
 0x1fb   :  { %1792 = dma.done.wait [#allocation9], 2048  }
 0x1fc   :  { %1793 = vsyncadd [#allocation9], 4294965248 }
 0x1fd   :  { %1127 = vsyncpa [#allocation3], 1 }
 0x1fe   :  { %1128 = vsyncpa [#allocation6], 1 }
 0x1ff   :  { %1129 = vsyncpa [#allocation4], 1 }
 0x200   :  { %1130 = vsyncpa [#allocation9], 1 }

</bundles_post_ra>
